<compile_context>
chip_gen: v5e
topology: v5e:2x2
jax: 0.10.0
libtpu: 0.0.40
codegen_flags: <defaults>
</compile_context>

<pallas_src>
import jax
import jax.numpy as jnp
import numpy as np
from jax.experimental import pallas as pl
from jax.experimental.pallas import tpu as pltpu


def _make_local_rfm_kernel(G, I, Ng, TB):
    W = (2 * I + 1) * G

    def kernel(x_ref, win_ref, bin_ref, wout_ref, o_ref):
        # x_ref : (TB, D + 2*I*G) halo-padded activations
        # win   : (W, D_r)  inner weight (transposed torch layout)
        # bin   : (1, D_r)  inner bias
        # wout  : (D_r, G)  outer weight (transposed torch layout), no bias
        # o_ref : (TB, D)   with D = Ng * G
        x = x_ref[...]

        # Rebuild the Ng circular windows via static lane slices of the
        # halo-padded block, stacked group-major along the row axis.
        xg = jnp.concatenate(
            [x[:, g * G:g * G + W] for g in range(Ng)], axis=0)      # (Ng*TB, W)

        # Hot path: matmul -> bias -> tanh -> matmul, f32 accumulation.
        # TODO(synk): optionally feed bf16 operands to the MXU (keeping the
        # f32 bias+tanh epilogue) when the accuracy budget allows.
        h = jnp.dot(xg, win_ref[...], preferred_element_type=jnp.float32)
        h = jnp.tanh(h + bin_ref[...])                               # (Ng*TB, D_r)
        y = jnp.dot(h, wout_ref[...],
                    preferred_element_type=jnp.float32)              # (Ng*TB, G)

        # Lane-dense store: out[b, g*G:(g+1)*G] = y[g*TB + b, :]
        o_ref[...] = jnp.concatenate(
            [y[g * TB:(g + 1) * TB, :] for g in range(Ng)], axis=1
        ).astype(o_ref.dtype)

    return kernel


def local_rfm_forward(x, w_in, b_in, w_out, G, I, *, row_tile=None):
    """LocalRFM.forward.  x: (..., D) -> (..., D).

    w_in : (W, D_r)   transposed torch `inner.weight`
    b_in : (1, D_r)   torch `inner.bias`
    w_out: (D_r, G)   transposed torch `outer.weight` (no bias)
    """
    orig_shape = x.shape
    D = orig_shape[-1]
    Ng = D // G
    W = (2 * I + 1) * G
    halo = I * G
    D_r = w_in.shape[1]

    x2 = x.reshape(-1, D)
    B = x2.shape[0]

    # Sublane-aligned row tile; batch padded up to a multiple of it.
    if row_tile is None:
        row_tile = min(max(B, 8), 256)
    TB = max(8, (row_tile // 8) * 8)
    Bp = ((B + TB - 1) // TB) * TB
    if Bp != B:
        x2 = jnp.pad(x2, ((0, Bp - B), (0, 0)))

    # Tiny circular halo instead of a (2I+1)x gather blow-up (indexing glue).
    x_ext = jnp.concatenate([x2[:, D - halo:], x2, x2[:, :halo]], axis=-1)

    grid = (Bp // TB,)
    kernel = _make_local_rfm_kernel(G, I, Ng, TB)

    cost = pl.CostEstimate(
        flops=2 * Bp * Ng * W * D_r + 2 * Bp * Ng * D_r * G,
        transcendentals=Bp * Ng * D_r,
        bytes_accessed=4 * (Bp * (D + 2 * halo) + W * D_r + D_r
                            + D_r * G + Bp * D),
    )

    out = pl.pallas_call(
        kernel,
        out_shape=jax.ShapeDtypeStruct((Bp, D), x.dtype),
        grid=grid,
        in_specs=[
            pl.BlockSpec((TB, D + 2 * halo), lambda i: (i, 0)),  # batch-tiled
            pl.BlockSpec((W, D_r), lambda i: (0, 0)),            # resident
            pl.BlockSpec((1, D_r), lambda i: (0, 0)),            # resident
            pl.BlockSpec((D_r, G), lambda i: (0, 0)),            # resident
        ],
        out_specs=pl.BlockSpec((TB, D), lambda i: (i, 0)),
        compiler_params=pltpu.CompilerParams(
            dimension_semantics=("parallel",),
            vmem_limit_bytes=32 * 1024 * 1024,
        ),
        cost_estimate=cost,
    )(x_ext, w_in, b_in, w_out)

    if Bp != B:
        out = out[:B]
    return out.reshape(orig_shape)


def build_index_tables(D, G, I):
    """Replicates LocalRFM.__init__ index construction (for the reference)."""
    Ng = D // G
    base = jnp.arange(-I * G, (I + 1) * G) % D                 # ((2I+1)*G,)
    return jnp.stack([(base + G * i) % D for i in range(Ng)])  # (Ng, (2I+1)*G)


if __name__ == "__main__":
    # Small shapes consistent with the module: D=16, D_r=32, G=4, I=1.
    D, D_r, G, I = 16, 32, 4, 1
    batch = 16                      # flattened leading dims; 2 grid steps @ TB=8
    Ng = D // G
    W = (2 * I + 1) * G

    key = jax.random.PRNGKey(0)
    k_x, k_win, k_bin, k_wout = jax.random.split(key, 4)

    x = jax.random.normal(k_x, (batch, D), dtype=jnp.float32)

    # torch Linear shapes: inner.weight (D_r, W), inner.bias (D_r,),
    # outer.weight (G, D_r); stored transposed here for x @ W.
    w_in = jax.random.normal(k_win, (W, D_r), dtype=jnp.float32) * 0.1
    b_in = jax.random.normal(k_bin, (1, D_r), dtype=jnp.float32) * 0.1
    w_out = jax.random.normal(k_wout, (D_r, G), dtype=jnp.float32) * 0.1

    out = local_rfm_forward(x, w_in, b_in, w_out, G, I, row_tile=8)
    out = jax.block_until_ready(out)

    # Pure-JAX reference (mirrors the torch module exactly).
    idx = build_index_tables(D, G, I)
    ref = (jnp.tanh(x[:, idx] @ w_in + b_in) @ w_out).reshape(batch, D)

    np.testing.assert_allclose(np.asarray(out), np.asarray(ref),
                               rtol=1e-5, atol=1e-5)
    print("KERNEL_OK")
</pallas_src>

<mosaic_0001>
module attributes {stable_mosaic.version = 11 : i64} {
  func.func @kernel(%arg0: i32, %arg1: memref<8x24xf32, #tpu.memory_space<vmem>>, %arg2: memref<12x32xf32, #tpu.memory_space<vmem>>, %arg3: memref<1x32xf32, #tpu.memory_space<vmem>>, %arg4: memref<32x4xf32, #tpu.memory_space<vmem>>, %arg5: memref<8x16xf32, #tpu.memory_space<vmem>>) attributes {dimension_semantics = [#tpu.dimension_semantics<parallel>], iteration_bounds = array<i64: 2>, scalar_prefetch = 0 : i64, scratch_operands = 0 : i64, tpu.core_type = #tpu.core_type<tc>, window_params = [{transform_indices = @transform_0, window_bounds = array<i64: 8, 24>}, {pipeline_mode = #tpu.pipeline_mode<synchronous>, transform_indices = @transform_1, window_bounds = array<i64: 12, 32>}, {pipeline_mode = #tpu.pipeline_mode<synchronous>, transform_indices = @transform_2, window_bounds = array<i64: 1, 32>}, {pipeline_mode = #tpu.pipeline_mode<synchronous>, transform_indices = @transform_3, window_bounds = array<i64: 32, 4>}, {transform_indices = @transform_4, window_bounds = array<i64: 8, 16>}]} {
    %c0 = arith.constant 0 : index
    %c0_0 = arith.constant 0 : index
    %0 = vector.load %arg1[%c0, %c0_0] : memref<8x24xf32, #tpu.memory_space<vmem>>, vector<8x24xf32>
    %1 = vector.extract_strided_slice %0 {offsets = [0, 0], sizes = [8, 12], strides = [1, 1]} : vector<8x24xf32> to vector<8x12xf32>
    %2 = vector.extract_strided_slice %0 {offsets = [0, 4], sizes = [8, 12], strides = [1, 1]} : vector<8x24xf32> to vector<8x12xf32>
    %3 = vector.extract_strided_slice %0 {offsets = [0, 8], sizes = [8, 12], strides = [1, 1]} : vector<8x24xf32> to vector<8x12xf32>
    %4 = vector.extract_strided_slice %0 {offsets = [0, 12], sizes = [8, 12], strides = [1, 1]} : vector<8x24xf32> to vector<8x12xf32>
    %5 = tpu.concatenate %1, %2, %3, %4 in 0 : vector<8x12xf32>, vector<8x12xf32>, vector<8x12xf32>, vector<8x12xf32> -> vector<32x12xf32>
    %c0_1 = arith.constant 0 : index
    %c0_2 = arith.constant 0 : index
    %6 = vector.load %arg2[%c0_1, %c0_2] : memref<12x32xf32, #tpu.memory_space<vmem>>, vector<12x32xf32>
    %cst = arith.constant dense<0.000000e+00> : vector<32x32xf32>
    %7 = tpu.matmul %5, %6, %cst {dimension_numbers = #tpu.dot_dimension_numbers<[1], [0], [0], [1], [0, 0, 1, 1], [], []>} : vector<32x12xf32>, vector<12x32xf32>, vector<32x32xf32> -> vector<32x32xf32>
    %c0_3 = arith.constant 0 : index
    %c0_4 = arith.constant 0 : index
    %8 = vector.load %arg3[%c0_3, %c0_4] : memref<1x32xf32, #tpu.memory_space<vmem>>, vector<1x32xf32>
    %9 = vector.broadcast %8 : vector<1x32xf32> to vector<32x32xf32>
    %10 = arith.addf %7, %9 : vector<32x32xf32>
    %11 = math.tanh %10 : vector<32x32xf32>
    %c0_5 = arith.constant 0 : index
    %c0_6 = arith.constant 0 : index
    %12 = vector.load %arg4[%c0_5, %c0_6] : memref<32x4xf32, #tpu.memory_space<vmem>>, vector<32x4xf32>
    %cst_7 = arith.constant dense<0.000000e+00> : vector<32x4xf32>
    %13 = tpu.matmul %11, %12, %cst_7 {dimension_numbers = #tpu.dot_dimension_numbers<[1], [0], [0], [1], [0, 0, 1, 1], [], []>} : vector<32x32xf32>, vector<32x4xf32>, vector<32x4xf32> -> vector<32x4xf32>
    %14 = vector.extract_strided_slice %13 {offsets = [0, 0], sizes = [8, 4], strides = [1, 1]} : vector<32x4xf32> to vector<8x4xf32>
    %15 = vector.extract_strided_slice %13 {offsets = [8, 0], sizes = [8, 4], strides = [1, 1]} : vector<32x4xf32> to vector<8x4xf32>
    %16 = vector.extract_strided_slice %13 {offsets = [16, 0], sizes = [8, 4], strides = [1, 1]} : vector<32x4xf32> to vector<8x4xf32>
    %17 = vector.extract_strided_slice %13 {offsets = [24, 0], sizes = [8, 4], strides = [1, 1]} : vector<32x4xf32> to vector<8x4xf32>
    %18 = tpu.concatenate %14, %15, %16, %17 in 1 : vector<8x4xf32>, vector<8x4xf32>, vector<8x4xf32>, vector<8x4xf32> -> vector<8x16xf32>
    %c0_8 = arith.constant 0 : index
    %c0_9 = arith.constant 0 : index
    %19 = vector.load %arg5[%c0_8, %c0_9] : memref<8x16xf32, #tpu.memory_space<vmem>>, vector<8x16xf32>
    tpu.vector_store %arg5[%c0_8, %c0_9], %18 {strides = array<i32>} : memref<8x16xf32, #tpu.memory_space<vmem>>, vector<8x16xf32>,
    return
  }
  func.func @transform_0(%arg0: i32) -> (i32, i32) {
    %c0_i32 = arith.constant 0 : i32
    %c0_i32_0 = arith.constant 0 : i32
    return %arg0, %c0_i32 : i32, i32
  }
  func.func @transform_1(%arg0: i32) -> (i32, i32) {
    %c0_i32 = arith.constant 0 : i32
    %c0_i32_0 = arith.constant 0 : i32
    %c0_i32_1 = arith.constant 0 : i32
    return %c0_i32, %c0_i32_0 : i32, i32
  }
  func.func @transform_2(%arg0: i32) -> (i32, i32) {
    %c0_i32 = arith.constant 0 : i32
    %c0_i32_0 = arith.constant 0 : i32
    %c0_i32_1 = arith.constant 0 : i32
    return %c0_i32, %c0_i32_0 : i32, i32
  }
  func.func @transform_3(%arg0: i32) -> (i32, i32) {
    %c0_i32 = arith.constant 0 : i32
    %c0_i32_0 = arith.constant 0 : i32
    %c0_i32_1 = arith.constant 0 : i32
    return %c0_i32, %c0_i32_0 : i32, i32
  }
  func.func @transform_4(%arg0: i32) -> (i32, i32) {
    %c0_i32 = arith.constant 0 : i32
    %c0_i32_0 = arith.constant 0 : i32
    return %arg0, %c0_i32 : i32, i32
  }
}

</mosaic_0001>

<bundles_post_ra>
// kernel: tpu_custom_call.1
= control target key start
LH: loop header
LB: loop body
LE: loop exit
PB: predicated region body
PF: predicated region fallthrough
CT: control target
= control target key end

     0   :  { %9 = vsyncpa [#allocation3], 0  ;;  %s682_s0 = inlined_call_operand.vmem [shape: f32[16,24], index: 0, kind: input, shape index: {}]   ;;  %s683_s1 = inlined_call_operand.vmem [shape: f32[12,32], index: 1, kind: input, shape index: {}]   ;;  %s684_s2 = inlined_call_operand.vmem [shape: f32[1,32], index: 2, kind: input, shape index: {}]   ;;  %s685_s3 = inlined_call_operand.vmem [shape: f32[32,4], index: 3, kind: input, shape index: {}]   ;;  %s686_s4 = inlined_call_operand.hbm [shape: f32[16,16], index: 4, kind: output, shape index: {}]  }
   0x1   :  { %11 = vsyncpa [#allocation3 + $0x1], 0  ;;  %s567_s15 = smov 0   ;;  %s569_s16 = smov 0  }
   0x2   :  { %s571_s17 = smov 0   ;;  %s573_s18 = smov 0  }
   0x3 LB: > { %s588_s19 = sadd.s32 4294967295, %s534_s18   ;;  %s393_s20 = sadd.s32 4294967294, %s534_s18   ;;  %s534_s18 = sphi %s573_s18, %s692_s18   ;;  %s530_s17 = sphi %s571_s17, %s691_s17   ;;  %s526_s16 = sphi %s569_s16, %s690_s16   ;;  %s522_s15 = sphi %s567_s15, %s689_s15  }
   0x4   : > { %s592_s21 = sadd.s32 1, %s534_s18   ;;  %s113_s22 = sadd.s32 1, %s530_s17 }
   0x5   : > { %s110_s23 = ssub.s32 %s534_s18, %s592_s21  ;;  %p123_p0 = scmp.ne.s32.totalorder %s530_s17, %s526_s16 }
   0x6   : > { %p111_p1 = scmp.eq.s32.totalorder %s110_s23, 0  ;;  %p124_p2 = scmp.eq.s32.totalorder %s588_s19, 1 }
   0x7   : > { %p129_p3 = scmp.ne.s32.totalorder %s526_s16, %s522_s15  ;;  %p130_p4 = scmp.eq.s32.totalorder %s393_s20, 1 }
   0x8   : > { %s603_s24 = scalar_select %p111_p1, %s530_s17, %s113_s22  }
   0x9   : > { %p605_p5 = por %p124_p2, %p123_p0  ;;  %p609_p6 = por %p130_p4, %p129_p3 }
   0xa   : > { %p396_p7 = scmp.ge.s32.totalorder %s534_s18, 1  ;;  %p164_p8 = scmp.lt.s32.totalorder %s534_s18, 3 }
   0xc   : > { %p165_p9 = pnand %p396_p7, %p164_p8 }
   0xd   : > { %p189_p10 = scmp.lt.s32.totalorder (!%p165_p9), %s588_s19, 1  ;;  %s536_s10 = smov (!%p165_p9), 124  }
   0xe   : > { %168 = sbr.rel (%p165_p9) target bundleno = 527 (0x20f), region = 36  ;;  %s537_s11 = smov (!%p165_p9), 116  }
   0xf   : > { %s538_s12 = smov (!%p165_p9), 120   ;;  %s540_s7 = smov (!%p165_p9), 8  }
  0x10   : > { %s541_s8 = smov (!%p165_p9), 12  }
  0x13   : > { %v202_v0 = vld [vmem:[%s683_s1 + $0x8] sm:$0xf]  ;;  %vm216_vm0 = vcmask 1043456   ;;  %v201_v1 = vld [vmem:[%s683_s1] sm:$0xff]  ;;  %s190_s5 = scalar_select %p189_p10, %s588_s19, 1  ;;  %vm207_vm1 = vcmask 97280  }
  0x14   : > { %399 = vmatpush.msk.msra.mxu0 %vm216_vm0, %v202_v0  ;;  %412 = vmatpush.msk.msra.mxu3 %vm216_vm0, %v202_v0  ;;  %v256_v3 = vld [vmem:[%s685_s3 + $0x18] sm:$0xff]  ;;  %v255_v4 = vld [vmem:[%s685_s3 + $0x10] sm:$0xff]  ;;  %v254_v5 = vld [vmem:[%s685_s3 + $0x8] sm:$0xff]  ;;  %vm257_vm2 = vcmask 261120   ;;  %vm311_vm3 = vcmask 31744   ;;  %vm313_vm4 = vcmask 64512  }
  0x15   : > { %s398_s6 = sshll.u32 %s190_s5, 3  ;;  %282 = vmatpush.msra.mxu1 %v256_v3  ;;  %414 = vmatpush.msra.mxu2 %v256_v3  ;;  %v463_v9 = vld [vmem:[%s684_s2] ss:$0 sm:$0xff]  ;;  %vm316_vm5 = vcmask 130048   ;;  %s492_s5 = scalar_lea.hbm %s686_s4, 16 }
  0x16   : > { %235 = vmatpush.msra.mxu0 %v201_v1  ;;  %413 = vmatpush.msra.mxu3 %v201_v1  ;;  %s192_s9 = scalar_lea.vmem %s682_s0, %s398_s6  ;;  %v253_v13 = vld [vmem:[%s685_s3] sm:$0xff]  ;;  %s539_s6 = smov 4  }
  0x17   : > { %v193_v2 = vld [vmem:[%s192_s9] sm:$0xff]  ;;  %283 = vmatpush.msra.mxu1 %v255_v4  ;;  %415 = vmatpush.msra.mxu2 %v255_v4  ;;  %s186_s9 = sand.u32 1, %s526_s16  }
  0x18   : > { %195 = vrot.lane.b32.xlu0 %v193_v2, %s536_s10  ;;  %199 = vrot.lane.b32.xlu1 %v193_v2, %s537_s11  ;;  %s397_s10 = sshll.u32 %s186_s9, 3  ;;  %s409_s11 = sshll.u32 %s588_s19, 3 }
  0x19   : > { %400 = vmatmul.msk.f32.vlgmr.msra.gmra.mxu0 %vm207_vm1, %v193_v2  ;;  %284 = vmatpush.msra.mxu1 %v254_v5  ;;  %s329_s14 = scalar_lea.hbm %s686_s4, %s409_s11  ;;  %s188_s20 = scalar_lea.vmem [#allocation2], %s397_s10 }
  0x1a   : > { %416 = vmatpush.msra.mxu2 %v254_v5  ;;  %s331_s22 = sshll.u32 %s188_s20, 4  ;;  %s333_s23 = sshll.u32 %s329_s14, 4  ;;  %s332_s22 = int_to_ptr.vmem [resolvable:$true] %s331_s22  ;;  %s334_s23 = int_to_ptr.hbm [resolvable:$true] %s333_s23 }
  0x1b   : > { %285 = vmatpush.msra.mxu1 %v253_v13  ;;  %s319_s19 = scalar_lea.sflag [#allocation3], %s186_s9  ;;  %s486_s27 = sshra.s32 %s334_s23, 4  ;;  %s487_s27 = int_to_ptr.hbm [resolvable:$true] %s486_s27 }
  0x1c   : > { %417 = vmatpush.msra.mxu2 %v253_v13  ;;  %s488_s28 = scalar_lea.hbm %s487_s27, 8  ;;  %p493_p0 = scmp.lt.s32.totalorder %s487_s27, %s686_s4 }
  0x1d   : > { %p489_p11 = scmp.ne.s32.totalorder %s487_s27, %s488_s28  ;;  %p494_p1 = scmp.lt.s32.totalorder %s492_s5, %s488_s28 }
  0x1f   : > { %p490_p12 = pnand %p489_p11, %p605_p5  ;;  %p495_p2 = por %p494_p1, %p493_p0 }
  0x20   : > { %197 = vrot.lane.b32.xlu0 %v193_v2, %s538_s12 }
  0x21   : > { %p491_p13 = pneg %p490_p12 }
  0x23   : > { %p496_p3 = pnand %p495_p2, %p491_p13 }
  0x8a   : > { %v196_v6 = vpop.permute.xlu0 %195  ;;  %v200_v8 = vpop.permute.xlu1 %199 }
  0x8b   : > { %401 = vmatmul.msk.f32.vlgmr.msra.gmra.mxu3 %vm207_vm1, %v196_v6 }
  0x92   : > { %v198_v7 = vpop.permute.xlu0 %197 }
  0x93   : > { %402 = vmatmul.msk.f32.gmra.mxu3 %vm207_vm1, %v198_v7 }
  0x96   : > { %v237_v10 = vpop.f32.mrf.mxu0 }
  0x97   : > { %v238_v11 = vadd.f32 %v463_v9, %v237_v10 }
  0x99   : > { %464 = vtanh.f32 %v238_v11 }
  0x9b   : > { %403 = vmatmul.msk.f32.gmra.mxu3 %vm207_vm1, %v200_v8 }
  0x9f   : > { %v465_v12 = vpop.eup %464 }
  0xa0   : > { %404 = vmatmul.msk.f32.vlgmr.msra.gmra.mxu1 %vm257_vm2, %v465_v12 }
 0x10e   : > { %v240_v14 = vpop.f32.mrf.mxu3 }
 0x10f   : > { %v241_v15 = vadd.f32 %v463_v9, %v240_v14 }
 0x111   : > { %466 = vtanh.f32 %v241_v15 }
 0x116   : > { %v243_v16 = vpop.f32.mrf.mxu3 }
 0x117   : > { %v467_v17 = vpop.eup %466  ;;  %v244_v18 = vadd.f32 %v463_v9, %v243_v16 }
 0x118   : > { %405 = vmatmul.msk.f32.gmra.mxu1 %vm257_vm2, %v467_v17 }
 0x119   : > { %468 = vtanh.f32 %v244_v18 }
 0x11d   : > { %v287_v23 = vpop.f32.mrf.mxu1 }
 0x11e   : > { %v246_v19 = vpop.f32.mrf.mxu3 }
 0x11f   : > { %v469_v20 = vpop.eup %468  ;;  %v247_v21 = vadd.f32 %v463_v9, %v246_v19 }
 0x120   : > { %406 = vmatmul.msk.f32.vlgmr.msra.gmra.mxu2 %vm257_vm2, %v469_v20 }
 0x121   : > { %470 = vtanh.f32 %v247_v21 }
 0x127   : > { %v471_v22 = vpop.eup %470 }
 0x128   : > { %407 = vmatmul.msk.f32.gmra.mxu2 %vm257_vm2, %v471_v22 }
 0x195   : > { %v290_v24 = vpop.f32.mrf.mxu1 }
 0x196   : > { %300 = vrot.lane.b32.xlu1 %v290_v24, %s539_s6 }
 0x1a3   : > { %v293_v25 = vpop.f32.mrf.mxu2 }
 0x1a4   : > { %304 = vrot.lane.b32.xlu2 %v293_v25, %s540_s7 }
 0x1ab   : > { %v296_v26 = vpop.f32.mrf.mxu2 }
 0x1ac   : > { %308 = vrot.lane.b32.xlu2 %v296_v26, %s541_s8 }
 0x1fe   : > { %v305_v27 = vpop.permute.xlu2 %304 }
 0x206   : > { %v309_v29 = vpop.permute.xlu2 %308 }
 0x208   : > { %v301_v28 = vpop.permute.xlu1 %300 }
 0x209   : > { %v312_v30 = vsel %vm311_vm3, %v287_v23, %v301_v28 }
 0x20a   : > { %v314_v31 = vsel %vm313_vm4, %v312_v30, %v305_v27 }
 0x20b   : > { %v315_v32 = vsel %vm207_vm1, %v314_v31, %v309_v29 }
 0x20c   : > { %317 = vst.msk [vmem:[%s188_s20] sm:$0xff] %vm316_vm5, %v315_v32 }
 0x20d   : > { %499 = shalt.err (!%p496_p3)
}
 0x20e   : > { %418 = dma.vmem_to_hbm [thread:$0]  (%p605_p5), %s332_s22, 128, %s334_s23, %s319_s19  }
 0x20f PF: > { %p424_p4 = scmp.ge.s32.totalorder %s534_s18, 2  ;;  %s345_s8 = sand.u32 1, %s522_s15  }
 0x210   : > { %s346_s9 = scalar_lea.sflag [#allocation3], %s345_s8 }
 0x211   : > { %p421_p7 = pnand %p424_p4, %p609_p6 }
 0x213   : > { %p422_p8 = pneg %p421_p7 }
 0x215   : > { %517 = dma.done.wait (%p422_p8), %s346_s9, 128  }
 0x216   : > { %519 = vsyncadd (%p422_p8), %s346_s9, 4294967168  ;;  %p14_p9 = scmp.ge.s32.totalorder %s592_s21, 4   ;;  %s689_s15 = smov %s526_s16 }
 0x217   : > { %s690_s16 = smov %s530_s17  ;;  %s691_s17 = smov %s603_s24 }
 0x218   : > { %s692_s18 = smov %s592_s21  ;;  %16 = sbr.rel (!%p14_p9) target bundleno = 3 (0x3), region = 71 }
 0x21d   :  { %352 = vsyncpa [#allocation3], 1 }
 0x21e   :  { %354 = vsyncpa [#allocation3 + $0x1], 1 }

</bundles_post_ra>
